<compile_context>
chip_gen: v6e
topology: v6e:2x2x1
jax: 0.10.0
libtpu: 0.0.40
codegen_flags: <defaults>
</compile_context>

<pallas_src>
import jax
import jax.numpy as jnp
from jax.experimental import pallas as pl
from jax.experimental.pallas import tpu as pltpu


def _round_up(x, m):
    return (x + m - 1) // m * m


def _pad_to(a, shape):
    return jnp.pad(a, [(0, t - s) for s, t in zip(a.shape, shape)])


def _emitter_kernel(z_ref, w123_ref, b123_ref, w4_ref, b4_ref, perm_ref, out_ref):
    """One batch tile: folded MLP + grouped softmax + in-kernel output repack."""
    num_classes, obsp, _ = perm_ref.shape

    # Folded lin_prop_latent_to_hidden + lin_prop_hidden_to_hidden +
    # lin_prop_hidden_to_props, then ReLU.  bf16 operands, f32 accumulation.
    h = jnp.dot(z_ref[...], w123_ref[...],
                preferred_element_type=jnp.float32) + b123_ref[...]
    h = jnp.maximum(h, 0.0).astype(jnp.bfloat16)

    # lin_props as ONE concatenated matmul over all class heads (class-major slabs
    # of width obsp).  Slab slices below are 128-aligned -> free vreg-boundary views.
    logits = jnp.dot(h, w4_ref[...],
                     preferred_element_type=jnp.float32) + b4_ref[...]

    # Per-obs softmax over classes: elementwise running max / exp / running sum over
    # the class slabs -- no cross-lane (XLU) work, no (gc x gc) mask.
    m = logits[:, :obsp]
    for c in range(1, num_classes):
        m = jnp.maximum(m, logits[:, c * obsp:(c + 1) * obsp])

    es = [jnp.exp(logits[:, c * obsp:(c + 1) * obsp] - m) for c in range(num_classes)]

    s = es[0]
    for c in range(1, num_classes):
        s = s + es[c]

    # EUP reciprocal (free slot); ~1e-4 relative error, covered by the test tolerance.
    inv = pl.reciprocal(s, approx=True)

    # Repack to the compact PyTorch layout (output column o*num_classes + c) with 0/1
    # selection matmuls: keeps the store lane-dense and drops the obsp/obs_dim padding
    # from the HBM writeback entirely.
    out = jnp.dot(es[0] * inv, perm_ref[0], preferred_element_type=jnp.float32)
    for c in range(1, num_classes):
        out = out + jnp.dot(es[c] * inv, perm_ref[c],
                            preferred_element_type=jnp.float32)
    out_ref[...] = out


def _prepare_params(params, *, obs_dim, num_classes, latent_dim):
    """Fold layers 1-3, build the concatenated class-head weight, build the repack
    matrices, pad everything to lane-dense shapes, cast MXU weights to bf16."""
    w1, b1, w2, b2, w3, b3, w4, b4 = params
    nce = w2.shape[0]               # num_classes * emission_dim
    nco = w4.shape[0]               # num_classes * obs_dim
    assert nco == obs_dim * num_classes
    del nce

    ncop = _round_up(nco, 128)      # padded hidden width after the fold
    obsp = _round_up(obs_dim, 128)  # per-class slab width inside the kernel
    packw = _round_up(nco, 128)     # packed output width (PyTorch column order)

    hi = jax.lax.Precision.HIGHEST
    # Fold all three pre-ReLU affine layers once, at highest precision, so the fold
    # itself adds no error relative to the unfused PyTorch graph.
    w12 = jnp.dot(w1, w2, precision=hi)
    b12 = jnp.dot(b1, w2, precision=hi) + b2
    w123 = jnp.dot(w12, w3, precision=hi)
    b123 = jnp.dot(b12, w3, precision=hi) + b3

    w123p = _pad_to(w123, (latent_dim, ncop)).astype(jnp.bfloat16)
    b123p = _pad_to(b123, (1, ncop))                      # bias stays f32

    # PyTorch's .view(-1, obs_dim, num_classes) means logits column j = o*C + c.
    # Regroup lin_props class-major (head c, slab position o) and concatenate the
    # heads into a single (ncop, num_classes*obsp) weight.
    w4h = jnp.transpose(w4.reshape(nco, obs_dim, num_classes), (2, 0, 1))  # (C,nco,obs)
    b4h = jnp.transpose(b4.reshape(1, obs_dim, num_classes), (2, 0, 1))    # (C,1,obs)
    w4hp = jnp.pad(w4h, ((0, 0), (0, ncop - nco), (0, obsp - obs_dim)))
    b4hp = jnp.pad(b4h, ((0, 0), (0, 0), (0, obsp - obs_dim)))
    w4cat = jnp.transpose(w4hp, (1, 0, 2)).reshape(ncop, num_classes * obsp)
    w4cat = w4cat.astype(jnp.bfloat16)
    b4cat = jnp.transpose(b4hp, (1, 0, 2)).reshape(1, num_classes * obsp)  # f32

    # 0/1 repack matrices: slab position (class c, obs o) -> packed column o*C + c.
    o_idx = jnp.arange(obsp)
    pages = []
    for c in range(num_classes):
        cols = o_idx * num_classes + c
        valid = o_idx < obs_dim
        page = (valid[:, None] &
                (cols[:, None] == jnp.arange(packw)[None, :])).astype(jnp.float32)
        pages.append(page)
    perm = jnp.stack(pages, axis=0)                        # (C, obsp, packw), f32

    return (w123p, b123p, w4cat, b4cat, perm), (ncop, obsp, packw)


def categorical_emitter_forward(z_t, params, *, obs_dim, num_classes,
                                block_batch=1024):
    """z_t: (B, latent_dim) float32 -> props: (B, obs_dim, num_classes) float32."""
    B, latent_dim = z_t.shape
    (w123p, b123p, w4cat, b4cat, perm), (ncop, obsp, packw) = _prepare_params(
        params, obs_dim=obs_dim, num_classes=num_classes, latent_dim=latent_dim)

    # Batch tile: multiple of 16 (native bf16 sublane tile); pad batch so the grid
    # divides evenly.  For large B, sweep block_batch in {512,1024,2048}.
    tb = _round_up(min(block_batch, _round_up(B, 16)), 16)
    pB = _round_up(B, tb)
    z_p = jnp.pad(z_t, ((0, pB - B), (0, 0))) if pB != B else z_t
    z_p = z_p.astype(jnp.bfloat16)            # bf16 MXU operand; also halves z traffic

    catw = num_classes * obsp

    out = pl.pallas_call(
        _emitter_kernel,
        out_shape=jax.ShapeDtypeStruct((pB, packw), jnp.float32),
        grid_spec=pltpu.PrefetchScalarGridSpec(
            num_scalar_prefetch=0,
            grid=(pB // tb,),
            in_specs=[
                # Activations: one batch tile per grid step (double-buffered).
                pl.BlockSpec((tb, latent_dim), lambda i: (i, 0)),
                # Weights / biases / repack matrices: constant block index ->
                # fetched once, VMEM-resident across the whole grid.
                pl.BlockSpec((latent_dim, ncop), lambda i: (0, 0)),
                pl.BlockSpec((1, ncop), lambda i: (0, 0)),
                pl.BlockSpec((ncop, catw), lambda i: (0, 0)),
                pl.BlockSpec((1, catw), lambda i: (0, 0)),
                pl.BlockSpec((num_classes, obsp, packw), lambda i: (0, 0, 0)),
            ],
            out_specs=pl.BlockSpec((tb, packw), lambda i: (i, 0)),
        ),
        compiler_params=pltpu.CompilerParams(
            # Independent batch tiles: shard across both TensorCores on v7x.
            dimension_semantics=("parallel",)),
    )(z_p, w123p, b123p, w4cat, b4cat, perm)

    # Packed column j = o*num_classes + c already matches torch's
    # .view(-1, obs_dim, num_classes): slice off padding and reshape — no transpose.
    return out[:B, :obs_dim * num_classes].reshape(B, obs_dim, num_classes)


def init_params(key, latent_dim, emission_dim, obs_dim, num_classes):
    nce = num_classes * emission_dim
    nco = num_classes * obs_dim
    ks = jax.random.split(key, 8)
    scale = 0.1
    # Weights stored as (in, out); biases as (1, out).
    w1 = scale * jax.random.normal(ks[0], (latent_dim, nce), jnp.float32)
    b1 = scale * jax.random.normal(ks[1], (1, nce), jnp.float32)
    w2 = scale * jax.random.normal(ks[2], (nce, nce), jnp.float32)
    b2 = scale * jax.random.normal(ks[3], (1, nce), jnp.float32)
    w3 = scale * jax.random.normal(ks[4], (nce, nco), jnp.float32)
    b3 = scale * jax.random.normal(ks[5], (1, nco), jnp.float32)
    w4 = scale * jax.random.normal(ks[6], (nco, nco), jnp.float32)
    b4 = scale * jax.random.normal(ks[7], (1, nco), jnp.float32)
    return (w1, b1, w2, b2, w3, b3, w4, b4)


def reference_forward(z_t, params, *, obs_dim, num_classes):
    """Unfused, near-f32-exact reference (HIGHEST precision), faithful to PyTorch."""
    w1, b1, w2, b2, w3, b3, w4, b4 = params
    hi = jax.lax.Precision.HIGHEST
    h1 = jnp.dot(z_t, w1, precision=hi) + b1
    h2 = jnp.dot(h1, w2, precision=hi) + b2
    h3 = jax.nn.relu(jnp.dot(h2, w3, precision=hi) + b3)
    logits = jnp.dot(h3, w4, precision=hi) + b4
    return jax.nn.softmax(logits.reshape(-1, obs_dim, num_classes), axis=2)


if __name__ == "__main__":
    obs_dim = 8
    num_classes = 4
    latent_dim = 16
    emission_dim = 8
    batch = 8

    key = jax.random.PRNGKey(0)
    k_params, k_z = jax.random.split(key)
    params = init_params(k_params, latent_dim, emission_dim, obs_dim, num_classes)
    z_t = jax.random.normal(k_z, (batch, latent_dim), jnp.float32)

    props = categorical_emitter_forward(
        z_t, params, obs_dim=obs_dim, num_classes=num_classes)
    props = jax.block_until_ready(props)

    ref = reference_forward(z_t, params, obs_dim=obs_dim, num_classes=num_classes)

    assert props.shape == (batch, obs_dim, num_classes)
    # bf16 MXU operands, approx reciprocal and the default-precision repack matmul
    # bound per-group normalization / parity at roughly the 1e-3 level; tolerances
    # are loosened accordingly (as flagged in the performance review).
    assert jnp.allclose(jnp.sum(props, axis=2), 1.0, atol=1e-2)
    assert jnp.allclose(props, ref, atol=1e-2, rtol=0.0)

    print("KERNEL_OK")
</pallas_src>

<mosaic_0001>
module attributes {stable_mosaic.version = 11 : i64} {
  func.func @_emitter_kernel(%arg0: i32, %arg1: memref<16x16xbf16, #tpu.memory_space<vmem>>, %arg2: memref<16x128xbf16, #tpu.memory_space<vmem>>, %arg3: memref<1x128xf32, #tpu.memory_space<vmem>>, %arg4: memref<128x512xbf16, #tpu.memory_space<vmem>>, %arg5: memref<1x512xf32, #tpu.memory_space<vmem>>, %arg6: memref<4x128x128xf32, #tpu.memory_space<vmem>>, %arg7: memref<16x128xf32, #tpu.memory_space<vmem>>) attributes {dimension_semantics = [#tpu.dimension_semantics<parallel>], iteration_bounds = array<i64: 1>, scalar_prefetch = 0 : i64, scratch_operands = 0 : i64, tpu.core_type = #tpu.core_type<tc>, window_params = [{transform_indices = @transform_0, window_bounds = array<i64: 16, 16>}, {pipeline_mode = #tpu.pipeline_mode<synchronous>, transform_indices = @transform_1, window_bounds = array<i64: 16, 128>}, {pipeline_mode = #tpu.pipeline_mode<synchronous>, transform_indices = @transform_2, window_bounds = array<i64: 1, 128>}, {pipeline_mode = #tpu.pipeline_mode<synchronous>, transform_indices = @transform_3, window_bounds = array<i64: 128, 512>}, {pipeline_mode = #tpu.pipeline_mode<synchronous>, transform_indices = @transform_4, window_bounds = array<i64: 1, 512>}, {pipeline_mode = #tpu.pipeline_mode<synchronous>, transform_indices = @transform_5, window_bounds = array<i64: 4, 128, 128>}, {transform_indices = @transform_6, window_bounds = array<i64: 16, 128>}]} {
    %c0 = arith.constant 0 : index
    %c0_0 = arith.constant 0 : index
    %0 = vector.load %arg1[%c0, %c0_0] : memref<16x16xbf16, #tpu.memory_space<vmem>>, vector<16x16xbf16>
    %c0_1 = arith.constant 0 : index
    %c0_2 = arith.constant 0 : index
    %1 = vector.load %arg2[%c0_1, %c0_2] : memref<16x128xbf16, #tpu.memory_space<vmem>>, vector<16x128xbf16>
    %cst = arith.constant dense<0.000000e+00> : vector<16x128xf32>
    %2 = tpu.matmul %0, %1, %cst {dimension_numbers = #tpu.dot_dimension_numbers<[1], [0], [0], [1], [0, 0, 1, 1], [], []>} : vector<16x16xbf16>, vector<16x128xbf16>, vector<16x128xf32> -> vector<16x128xf32>
    %c0_3 = arith.constant 0 : index
    %c0_4 = arith.constant 0 : index
    %3 = vector.load %arg3[%c0_3, %c0_4] : memref<1x128xf32, #tpu.memory_space<vmem>>, vector<1x128xf32>
    %4 = vector.broadcast %3 : vector<1x128xf32> to vector<16x128xf32>
    %5 = arith.addf %2, %4 : vector<16x128xf32>
    %cst_5 = arith.constant 0.000000e+00 : f32
    %6 = vector.broadcast %cst_5 : f32 to vector<16x128xf32>
    %7 = arith.maximumf %5, %6 : vector<16x128xf32>
    %8 = arith.truncf %7 : vector<16x128xf32> to vector<16x128xbf16>
    %c0_6 = arith.constant 0 : index
    %c0_7 = arith.constant 0 : index
    %9 = vector.load %arg4[%c0_6, %c0_7] : memref<128x512xbf16, #tpu.memory_space<vmem>>, vector<128x512xbf16>
    %cst_8 = arith.constant dense<0.000000e+00> : vector<16x512xf32>
    %10 = tpu.matmul %8, %9, %cst_8 {dimension_numbers = #tpu.dot_dimension_numbers<[1], [0], [0], [1], [0, 0, 1, 1], [], []>} : vector<16x128xbf16>, vector<128x512xbf16>, vector<16x512xf32> -> vector<16x512xf32>
    %c0_9 = arith.constant 0 : index
    %c0_10 = arith.constant 0 : index
    %11 = vector.load %arg5[%c0_9, %c0_10] : memref<1x512xf32, #tpu.memory_space<vmem>>, vector<1x512xf32>
    %12 = vector.broadcast %11 : vector<1x512xf32> to vector<16x512xf32>
    %13 = arith.addf %10, %12 : vector<16x512xf32>
    %14 = vector.extract_strided_slice %13 {offsets = [0, 0], sizes = [16, 128], strides = [1, 1]} : vector<16x512xf32> to vector<16x128xf32>
    %15 = vector.extract_strided_slice %13 {offsets = [0, 128], sizes = [16, 128], strides = [1, 1]} : vector<16x512xf32> to vector<16x128xf32>
    %16 = arith.maximumf %14, %15 : vector<16x128xf32>
    %17 = vector.extract_strided_slice %13 {offsets = [0, 256], sizes = [16, 128], strides = [1, 1]} : vector<16x512xf32> to vector<16x128xf32>
    %18 = arith.maximumf %16, %17 : vector<16x128xf32>
    %19 = vector.extract_strided_slice %13 {offsets = [0, 384], sizes = [16, 128], strides = [1, 1]} : vector<16x512xf32> to vector<16x128xf32>
    %20 = arith.maximumf %18, %19 : vector<16x128xf32>
    %21 = vector.extract_strided_slice %13 {offsets = [0, 0], sizes = [16, 128], strides = [1, 1]} : vector<16x512xf32> to vector<16x128xf32>
    %22 = arith.subf %21, %20 : vector<16x128xf32>
    %23 = math.exp %22 : vector<16x128xf32>
    %24 = vector.extract_strided_slice %13 {offsets = [0, 128], sizes = [16, 128], strides = [1, 1]} : vector<16x512xf32> to vector<16x128xf32>
    %25 = arith.subf %24, %20 : vector<16x128xf32>
    %26 = math.exp %25 : vector<16x128xf32>
    %27 = vector.extract_strided_slice %13 {offsets = [0, 256], sizes = [16, 128], strides = [1, 1]} : vector<16x512xf32> to vector<16x128xf32>
    %28 = arith.subf %27, %20 : vector<16x128xf32>
    %29 = math.exp %28 : vector<16x128xf32>
    %30 = vector.extract_strided_slice %13 {offsets = [0, 384], sizes = [16, 128], strides = [1, 1]} : vector<16x512xf32> to vector<16x128xf32>
    %31 = arith.subf %30, %20 : vector<16x128xf32>
    %32 = math.exp %31 : vector<16x128xf32>
    %33 = arith.addf %23, %26 : vector<16x128xf32>
    %34 = arith.addf %33, %29 : vector<16x128xf32>
    %35 = arith.addf %34, %32 : vector<16x128xf32>
    %36 = tpu.reciprocal %35 {approx = true} : vector<16x128xf32> -> vector<16x128xf32>
    %37 = arith.mulf %23, %36 : vector<16x128xf32>
    %c0_11 = arith.constant 0 : index
    %c0_12 = arith.constant 0 : index
    %c0_13 = arith.constant 0 : index
    %38 = vector.load %arg6[%c0_11, %c0_12, %c0_13] : memref<4x128x128xf32, #tpu.memory_space<vmem>>, vector<1x128x128xf32>
    %39 = vector.shape_cast %38 : vector<1x128x128xf32> to vector<128x128xf32>
    %cst_14 = arith.constant dense<0.000000e+00> : vector<16x128xf32>
    %40 = tpu.matmul %37, %39, %cst_14 {dimension_numbers = #tpu.dot_dimension_numbers<[1], [0], [0], [1], [0, 0, 1, 1], [], []>} : vector<16x128xf32>, vector<128x128xf32>, vector<16x128xf32> -> vector<16x128xf32>
    %41 = arith.mulf %26, %36 : vector<16x128xf32>
    %c1 = arith.constant 1 : index
    %c0_15 = arith.constant 0 : index
    %c0_16 = arith.constant 0 : index
    %42 = vector.load %arg6[%c1, %c0_15, %c0_16] : memref<4x128x128xf32, #tpu.memory_space<vmem>>, vector<1x128x128xf32>
    %43 = vector.shape_cast %42 : vector<1x128x128xf32> to vector<128x128xf32>
    %cst_17 = arith.constant dense<0.000000e+00> : vector<16x128xf32>
    %44 = tpu.matmul %41, %43, %cst_17 {dimension_numbers = #tpu.dot_dimension_numbers<[1], [0], [0], [1], [0, 0, 1, 1], [], []>} : vector<16x128xf32>, vector<128x128xf32>, vector<16x128xf32> -> vector<16x128xf32>
    %45 = arith.addf %40, %44 : vector<16x128xf32>
    %46 = arith.mulf %29, %36 : vector<16x128xf32>
    %c2 = arith.constant 2 : index
    %c0_18 = arith.constant 0 : index
    %c0_19 = arith.constant 0 : index
    %47 = vector.load %arg6[%c2, %c0_18, %c0_19] : memref<4x128x128xf32, #tpu.memory_space<vmem>>, vector<1x128x128xf32>
    %48 = vector.shape_cast %47 : vector<1x128x128xf32> to vector<128x128xf32>
    %cst_20 = arith.constant dense<0.000000e+00> : vector<16x128xf32>
    %49 = tpu.matmul %46, %48, %cst_20 {dimension_numbers = #tpu.dot_dimension_numbers<[1], [0], [0], [1], [0, 0, 1, 1], [], []>} : vector<16x128xf32>, vector<128x128xf32>, vector<16x128xf32> -> vector<16x128xf32>
    %50 = arith.addf %45, %49 : vector<16x128xf32>
    %51 = arith.mulf %32, %36 : vector<16x128xf32>
    %c3 = arith.constant 3 : index
    %c0_21 = arith.constant 0 : index
    %c0_22 = arith.constant 0 : index
    %52 = vector.load %arg6[%c3, %c0_21, %c0_22] : memref<4x128x128xf32, #tpu.memory_space<vmem>>, vector<1x128x128xf32>
    %53 = vector.shape_cast %52 : vector<1x128x128xf32> to vector<128x128xf32>
    %cst_23 = arith.constant dense<0.000000e+00> : vector<16x128xf32>
    %54 = tpu.matmul %51, %53, %cst_23 {dimension_numbers = #tpu.dot_dimension_numbers<[1], [0], [0], [1], [0, 0, 1, 1], [], []>} : vector<16x128xf32>, vector<128x128xf32>, vector<16x128xf32> -> vector<16x128xf32>
    %55 = arith.addf %50, %54 : vector<16x128xf32>
    %c0_24 = arith.constant 0 : index
    %c0_25 = arith.constant 0 : index
    %56 = vector.load %arg7[%c0_24, %c0_25] : memref<16x128xf32, #tpu.memory_space<vmem>>, vector<16x128xf32>
    tpu.vector_store %arg7[%c0_24, %c0_25], %55 {strides = array<i32>} : memref<16x128xf32, #tpu.memory_space<vmem>>, vector<16x128xf32>,
    return
  }
  func.func @transform_0(%arg0: i32) -> (i32, i32) {
    %c0_i32 = arith.constant 0 : i32
    %c0_i32_0 = arith.constant 0 : i32
    return %arg0, %c0_i32 : i32, i32
  }
  func.func @transform_1(%arg0: i32) -> (i32, i32) {
    %c0_i32 = arith.constant 0 : i32
    %c0_i32_0 = arith.constant 0 : i32
    %c0_i32_1 = arith.constant 0 : i32
    return %c0_i32, %c0_i32_0 : i32, i32
  }
  func.func @transform_2(%arg0: i32) -> (i32, i32) {
    %c0_i32 = arith.constant 0 : i32
    %c0_i32_0 = arith.constant 0 : i32
    %c0_i32_1 = arith.constant 0 : i32
    return %c0_i32, %c0_i32_0 : i32, i32
  }
  func.func @transform_3(%arg0: i32) -> (i32, i32) {
    %c0_i32 = arith.constant 0 : i32
    %c0_i32_0 = arith.constant 0 : i32
    %c0_i32_1 = arith.constant 0 : i32
    return %c0_i32, %c0_i32_0 : i32, i32
  }
  func.func @transform_4(%arg0: i32) -> (i32, i32) {
    %c0_i32 = arith.constant 0 : i32
    %c0_i32_0 = arith.constant 0 : i32
    %c0_i32_1 = arith.constant 0 : i32
    return %c0_i32, %c0_i32_0 : i32, i32
  }
  func.func @transform_5(%arg0: i32) -> (i32, i32, i32) {
    %c0_i32 = arith.constant 0 : i32
    %c0_i32_0 = arith.constant 0 : i32
    %c0_i32_1 = arith.constant 0 : i32
    %c0_i32_2 = arith.constant 0 : i32
    return %c0_i32, %c0_i32_0, %c0_i32_1 : i32, i32, i32
  }
  func.func @transform_6(%arg0: i32) -> (i32, i32) {
    %c0_i32 = arith.constant 0 : i32
    %c0_i32_0 = arith.constant 0 : i32
    return %arg0, %c0_i32 : i32, i32
  }
}

</mosaic_0001>

<bundles_post_ra>
// kernel: tpu_custom_call.1
= control target key start
LH: loop header
LB: loop body
LE: loop exit
PB: predicated region body
PF: predicated region fallthrough
CT: control target
= control target key end

     0   :  { %11 = vsyncpa [#allocation3], 0  ;;  %s1434_s0 = inlined_call_operand.hbm [shape: bf16[16,16], index: 0, kind: input, shape index: {}]   ;;  %s1435_s1 = inlined_call_operand.hbm [shape: bf16[16,128], index: 1, kind: input, shape index: {}]   ;;  %s1436_s2 = inlined_call_operand.vmem [shape: f32[1,128], index: 2, kind: input, shape index: {}]   ;;  %s1437_s3 = inlined_call_operand.hbm [shape: bf16[128,512], index: 3, kind: input, shape index: {}]   ;;  %s1438_s4 = inlined_call_operand.vmem [shape: f32[1,512], index: 4, kind: input, shape index: {}]   ;;  %s1439_s5 = inlined_call_operand.hbm [shape: f32[4,128,128], index: 5, kind: input, shape index: {}]   ;;  %s1440_s6 = inlined_call_operand.hbm [shape: f32[16,128], index: 6, kind: output, shape index: {}]  }
   0x1   :  { %12 = vsyncpa [#allocation6], 0 }
   0x2   :  { %13 = vsyncpa [#allocation9], 0 }
   0x3   :  { %14 = vsyncpa [#allocation4], 0  ;;  %s1336_s21 = smov [#allocation5]   ;;  %s1337_s23 = smov [#allocation2]  }
   0x4   :  { %s32_s22 = sshll.u32 %s1336_s21, 4  ;;  %s20_s24 = sshll.u32 %s1337_s23, 4  ;;  %s33_s22 = int_to_ptr.vmem [resolvable:$true] %s32_s22  ;;  %s21_s24 = int_to_ptr.vmem [resolvable:$true] %s20_s24 }
   0x5   :  { %s1236_s25 = scalar_lea.vmem %s33_s22, 128  ;;  %p1241_p1 = scmp.lt.s32.totalorder %s33_s22, %s33_s22 }
   0x6   :  { %p1237_p0 = scmp.ne.s32.totalorder %s33_s22, %s1236_s25  ;;  %p1242_p2 = scmp.lt.s32.totalorder %s1236_s25, %s1236_s25 }
   0x8   :  { %p1243_p3 = por %p1242_p2, %p1241_p1 }
   0xa   :  { %p1244_p4 = pnand %p1243_p3, %p1237_p0 }
   0xc   :  { %1247 = shalt.err (!%p1244_p4)
}
   0xd   :  { %s1338_s26 = smov 64   ;;  %s1339_s27 = smov 4  }
   0xe   :  { %38 = dma.hbm_to_vmem [thread:$0]  %s1435_s1, 128, %s33_s22, [#allocation6], %s1338_s26, %s1338_s26, %s1339_s27  }
   0xf   :  { %s1256_s30 = scalar_lea.vmem %s21_s24, 128  ;;  %p1261_p6 = scmp.lt.s32.totalorder %s21_s24, %s21_s24 }
  0x10   :  { %p1257_p5 = scmp.ne.s32.totalorder %s21_s24, %s1256_s30  ;;  %p1262_p7 = scmp.lt.s32.totalorder %s1256_s30, %s1256_s30 }
  0x12   :  { %p1263_p8 = por %p1262_p7, %p1261_p6 }
  0x14   :  { %p1264_p9 = pnand %p1263_p8, %p1257_p5 }
  0x16   :  { %1267 = shalt.err (!%p1264_p9)
}
  0x17   :  { %26 = dma.hbm_to_vmem [thread:$0]  %s1434_s0, 128, %s21_s24, [#allocation3], %s1338_s26, %s1338_s26, %s1339_s27  }
  0x18   :  { %s1340_s9 = smov [#allocation7]  }
  0x19   :  { %s46_s10 = sshll.u32 %s1340_s9, 4  ;;  %s47_s10 = int_to_ptr.vmem [resolvable:$true] %s46_s10 }
  0x1a   :  { %s1276_s11 = scalar_lea.vmem %s47_s10, 4096  ;;  %p1281_p11 = scmp.lt.s32.totalorder %s47_s10, %s47_s10 }
  0x1b   :  { %p1277_p10 = scmp.ne.s32.totalorder %s47_s10, %s1276_s11  ;;  %p1282_p12 = scmp.lt.s32.totalorder %s1276_s11, %s1276_s11 }
  0x1d   :  { %p1283_p13 = por %p1282_p12, %p1281_p11 }
  0x1f   :  { %p1284_p0 = pnand %p1283_p13, %p1277_p10 }
  0x21   :  { %1287 = shalt.err (!%p1284_p0)
}
  0x22   :  { %s1341_s1 = smov 256   ;;  %s1342_s12 = smov 16  }
  0x23   :  { %52 = dma.hbm_to_vmem [thread:$0]  %s1437_s3, 4096, %s47_s10, [#allocation6], %s1341_s1, %s1341_s1, %s1342_s12  }
  0x24   :  { %s1343_s15 = smov [#allocation8]  }
  0x25   :  { %s60_s16 = sshll.u32 %s1343_s15, 4  ;;  %s61_s16 = int_to_ptr.vmem [resolvable:$true] %s60_s16 }
  0x26   :  { %s1296_s0 = scalar_lea.vmem %s61_s16, 8192  ;;  %p1301_p2 = scmp.lt.s32.totalorder %s61_s16, %s61_s16 }
  0x27   :  { %p1297_p1 = scmp.ne.s32.totalorder %s61_s16, %s1296_s0  ;;  %p1302_p3 = scmp.lt.s32.totalorder %s1296_s0, %s1296_s0 }
  0x29   :  { %p1303_p4 = por %p1302_p3, %p1301_p2 }
  0x2b   :  { %p1304_p5 = pnand %p1303_p4, %p1297_p1 }
  0x2d   :  { %1307 = shalt.err (!%p1304_p5)
}
  0x2e   :  { %s1344_s17 = smov 128   ;;  %s1345_s18 = smov 8  }
  0x2f   :  { %66 = dma.hbm_to_vmem [thread:$0]  %s1439_s5, 8192, %s61_s16, [#allocation9], %s1344_s17, %s1344_s17, %s1345_s18  }
  0x30   :  { %1328 = dma.done.wait [#allocation3], 128  }
  0x31   :  { %1329 = vsyncadd [#allocation3], 4294967168 }
  0x32   :  { %1330 = dma.done.wait [#allocation6], 4224  }
  0x33   :  { %1331 = vsyncadd [#allocation6], 4294963072 }
  0x34   :  { %1332 = dma.done.wait [#allocation9], 8192  }
  0x35   :  { %1333 = vsyncadd [#allocation9], 4294959104  ;;  %v1346_v0 = vmov 0.0   ;;  %vm1347_vm0 = vmmov 0   ;;  %v1158_v1 = vld [vmem:[#allocation5] sm:$0xff]   ;;  %v1159_v2 = vld [vmem:[#allocation2] sm:$0xff]  }
  0x36   :  { %998 = vmatprep.subr.bf16.mxu0 %v1346_v0  ;;  %1000 = vmatprep.mubr.msk.bf16.mxu0 %vm1347_vm0, %v1346_v0  ;;  %vm102_vm1 = vcmask 130048   ;;  %v1160_v3 = vld [vmem:[#allocation7 + $0xe4] ss:$16 sps:$4 sm:$0xff]   ;;  %v1162_v4 = vld [vmem:[#allocation7 + $0xe8] ss:$16 sps:$4 sm:$0xff]   ;;  %v1348_v35 = vmov 0  }
  0x37   :  { %999 = vmatpush3.bf16.msra.mxu0 %v1158_v1  ;;  %364 = vmatprep.subr.bf16.mxu1 %v1160_v3  ;;  %v1164_v5 = vld [vmem:[#allocation7 + $0xec] ss:$16 sps:$4 sm:$0xff]   ;;  %v1165_v6 = vld [vmem:[#allocation7 + $0xe0] ss:$16 sps:$4 sm:$0xff]   ;;  %v1166_v7 = vld [vmem:[#allocation7 + $0xc4] ss:$16 sps:$4 sm:$0xff]  }
  0x38   :  { %407 = vmatprep.subr.bf16.mxu0 %v1164_v5  ;;  %365 = vmatpush1.bf16.msra.mxu1 %v1165_v6  ;;  %v1168_v8 = vld [vmem:[#allocation7 + $0xc8] ss:$16 sps:$4 sm:$0xff]   ;;  %v1170_v9 = vld [vmem:[#allocation7 + $0xcc] ss:$16 sps:$4 sm:$0xff]   ;;  %v1171_v10 = vld [vmem:[#allocation7 + $0xc0] ss:$16 sps:$4 sm:$0xff]  }
  0x39   :  { %366 = vmatprep.subr.bf16.mxu1 %v1166_v7  ;;  %v1172_v11 = vld [vmem:[#allocation7 + $0xa4] ss:$16 sps:$4 sm:$0xff]   ;;  %v1174_v12 = vld [vmem:[#allocation7 + $0xa8] ss:$16 sps:$4 sm:$0xff]   ;;  %v1176_v13 = vld [vmem:[#allocation7 + $0xac] ss:$16 sps:$4 sm:$0xff]   ;;  %396 = vmatprep.mubr.bf16.mxu1 %v1348_v35 }
  0x3a   :  { %1001 = vmatmul.mubr.msk.bf16.vlgmr.msra.gmra.mxu0 %vm102_vm1, %v1159_v2  ;;  %v1177_v14 = vld [vmem:[#allocation7 + $0xa0] ss:$16 sps:$4 sm:$0xff]   ;;  %v1178_v15 = vld [vmem:[#allocation7 + $0x84] ss:$16 sps:$4 sm:$0xff]   ;;  %v1182_v16 = vld [vmem:[#allocation7 + $0x8c] ss:$16 sps:$4 sm:$0xff]  }
  0x3b   :  { %408 = vmatpush1.bf16.msra.mxu0 %v1162_v4  ;;  %v1180_v17 = vld [vmem:[#allocation7 + $0x88] ss:$16 sps:$4 sm:$0xff]   ;;  %v1183_v18 = vld [vmem:[#allocation7 + $0x80] ss:$16 sps:$4 sm:$0xff]   ;;  %v1184_v19 = vld [vmem:[#allocation7 + $0x64] ss:$16 sps:$4 sm:$0xff]   ;;  %439 = vmatprep.mubr.bf16.mxu0 %v1348_v35 }
  0x3c   :  { %409 = vmatprep.subr.bf16.mxu0 %v1170_v9  ;;  %367 = vmatpush1.bf16.msra.mxu1 %v1171_v10  ;;  %v1188_v20 = vld [vmem:[#allocation7 + $0x6c] ss:$16 sps:$4 sm:$0xff]   ;;  %v1186_v21 = vld [vmem:[#allocation7 + $0x68] ss:$16 sps:$4 sm:$0xff]   ;;  %v1189_v22 = vld [vmem:[#allocation7 + $0x60] ss:$16 sps:$4 sm:$0xff]  }
  0x3d   :  { %368 = vmatprep.subr.bf16.mxu1 %v1172_v11  ;;  %v1190_v23 = vld [vmem:[#allocation7 + $0x44] ss:$16 sps:$4 sm:$0xff]   ;;  %v1194_v24 = vld [vmem:[#allocation7 + $0x4c] ss:$16 sps:$4 sm:$0xff]   ;;  %v1192_v25 = vld [vmem:[#allocation7 + $0x48] ss:$16 sps:$4 sm:$0xff]  }
  0x3e   :  { %v1195_v26 = vld [vmem:[#allocation7 + $0x40] ss:$16 sps:$4 sm:$0xff]   ;;  %v1196_v27 = vld [vmem:[#allocation7 + $0x24] ss:$16 sps:$4 sm:$0xff]   ;;  %v1200_v28 = vld [vmem:[#allocation7 + $0x2c] ss:$16 sps:$4 sm:$0xff]  }
  0x3f   :  { %410 = vmatpush1.bf16.msra.mxu0 %v1168_v8  ;;  %v1198_v29 = vld [vmem:[#allocation7 + $0x28] ss:$16 sps:$4 sm:$0xff]   ;;  %v1201_v30 = vld [vmem:[#allocation7 + $0x20] ss:$16 sps:$4 sm:$0xff]   ;;  %v1202_v31 = vld [vmem:[#allocation7 + $0x4] ss:$16 sps:$4 sm:$0xff]  }
  0x40   :  { %411 = vmatprep.subr.bf16.mxu0 %v1176_v13  ;;  %369 = vmatpush1.bf16.msra.mxu1 %v1177_v14  ;;  %v1206_v32 = vld [vmem:[#allocation7 + $0xc] ss:$16 sps:$4 sm:$0xff]   ;;  %v1204_v33 = vld [vmem:[#allocation7 + $0x8] ss:$16 sps:$4 sm:$0xff]   ;;  %v1207_v34 = vld [vmem:[#allocation7] ss:$16 sps:$4 sm:$0xff]  }
  0x41   :  { %370 = vmatprep.subr.bf16.mxu1 %v1178_v15  ;;  %v888_v36 = vld [vmem:[%s1436_s2] ss:$0 sm:$0xff]  ;;  %v524_v46 = vld [vmem:[#allocation8 + $0xf8] sm:$0xff]  ;;  %v522_v50 = vld [vmem:[#allocation8 + $0xe8] sm:$0xff] }
  0x42   :  { %v505_v47 = vld [vmem:[#allocation8 + $0x78] sm:$0xff]  ;;  %v523_v48 = vld [vmem:[#allocation8 + $0xf0] sm:$0xff]  ;;  %v503_v51 = vld [vmem:[#allocation8 + $0x68] sm:$0xff] }
  0x43   :  { %412 = vmatpush1.bf16.msra.mxu0 %v1174_v12  ;;  %v504_v49 = vld [vmem:[#allocation8 + $0x70] sm:$0xff]  ;;  %v521_v52 = vld [vmem:[#allocation8 + $0xe0] sm:$0xff]  ;;  %v520_v54 = vld [vmem:[#allocation8 + $0xd8] sm:$0xff] }
  0x44   :  { %413 = vmatprep.subr.bf16.mxu0 %v1182_v16  ;;  %371 = vmatpush1.bf16.msra.mxu1 %v1183_v18  ;;  %v502_v53 = vld [vmem:[#allocation8 + $0x60] sm:$0xff]  ;;  %v501_v55 = vld [vmem:[#allocation8 + $0x58] sm:$0xff]  ;;  %v519_v56 = vld [vmem:[#allocation8 + $0xd0] sm:$0xff]  ;;  %v184_v16 = vlaneseq }
  0x45   :  { %372 = vmatprep.subr.bf16.mxu1 %v1184_v19  ;;  %v500_v57 = vld [vmem:[#allocation8 + $0x50] sm:$0xff]  ;;  %v518_v58 = vld [vmem:[#allocation8 + $0xc8] sm:$0xff]  ;;  %v517_v60 = vld [vmem:[#allocation8 + $0xc0] sm:$0xff] }
  0x46   :  { %v499_v59 = vld [vmem:[#allocation8 + $0x48] sm:$0xff]  ;;  %v498_v61 = vld [vmem:[#allocation8 + $0x40] sm:$0xff]  ;;  %v516_v62 = vld [vmem:[#allocation8 + $0xb8] sm:$0xff] }
  0x47   :  { %414 = vmatpush1.bf16.msra.mxu0 %v1180_v17  ;;  %v497_v63 = vld [vmem:[#allocation8 + $0x38] sm:$0xff]  ;;  %v515_v0 = vld [vmem:[#allocation8 + $0xb0] sm:$0xff]  ;;  %v514_v2 = vld [vmem:[#allocation8 + $0xa8] sm:$0xff]  ;;  %v185_v17 = vshrl.u32 %v184_v16, 7 }
  0x48   :  { %415 = vmatprep.subr.bf16.mxu0 %v1188_v20  ;;  %373 = vmatpush1.bf16.msra.mxu1 %v1189_v22  ;;  %v496_v1 = vld [vmem:[#allocation8 + $0x30] sm:$0xff]  ;;  %v495_v3 = vld [vmem:[#allocation8 + $0x28] sm:$0xff]  ;;  %v513_v4 = vld [vmem:[#allocation8 + $0xa0] sm:$0xff] }
  0x49   :  { %374 = vmatprep.subr.bf16.mxu1 %v1190_v23  ;;  %v494_v5 = vld [vmem:[#allocation8 + $0x20] sm:$0xff]  ;;  %v512_v6 = vld [vmem:[#allocation8 + $0x98] sm:$0xff]  ;;  %v511_v8 = vld [vmem:[#allocation8 + $0x90] sm:$0xff]  ;;  %v186_v18 = vsub.s32 0, %v185_v17  ;;  %v190_v19 = vsub.s32 1, %v185_v17 }
  0x4a   :  { %v493_v7 = vld [vmem:[#allocation8 + $0x18] sm:$0xff]  ;;  %v492_v9 = vld [vmem:[#allocation8 + $0x10] sm:$0xff]  ;;  %v510_v10 = vld [vmem:[#allocation8 + $0x88] sm:$0xff] }
  0x4b   :  { %416 = vmatpush1.bf16.msra.mxu0 %v1186_v21  ;;  %v491_v11 = vld [vmem:[#allocation8 + $0x8] sm:$0xff]  ;;  %v509_v12 = vld [vmem:[#allocation8 + $0x80] sm:$0xff]  ;;  %v1403_v14 = vld [vmem:[#allocation8 + $0x178] sm:$0xff]  ;;  %v194_v21 = vsub.s32 2, %v185_v17 }
  0x4c   :  { %417 = vmatprep.subr.bf16.mxu0 %v1194_v24  ;;  %375 = vmatpush1.bf16.msra.mxu1 %v1195_v26  ;;  %v490_v13 = vld [vmem:[#allocation8] sm:$0xff]  ;;  %v1405_v15 = vld [vmem:[#allocation8 + $0x1f8] sm:$0xff]  ;;  %v182_v20 = vld [vmem:[%s1438_s4] sm:$0xf]  ;;  %v198_v24 = vsub.s32 3, %v185_v17  ;;  %s1349_s4 = smov [#allocation10]  }
  0x4d   :  { %376 = vmatprep.subr.bf16.mxu1 %v1196_v27  ;;  %v187_v22 = vrot.slane %v182_v20, %v186_v18  ;;  %v191_v23 = vrot.slane %v182_v20, %v190_v19  ;;  %v195_v27 = vrot.slane %v182_v20, %v194_v21  ;;  %s874_s22 = sshll.u32 %s1349_s4, 4  ;;  %s875_s22 = int_to_ptr.vmem [resolvable:$true] %s874_s22 }
  0x4e   :  { %s1308_s23 = scalar_lea.vmem %s875_s22, 256  ;;  %p1313_p7 = scmp.lt.s32.totalorder %s875_s22, %s875_s22 }
  0x4f   :  { %418 = vmatpush1.bf16.msra.mxu0 %v1192_v25  ;;  %p1309_p6 = scmp.ne.s32.totalorder %s875_s22, %s1308_s23  ;;  %p1314_p8 = scmp.lt.s32.totalorder %s1308_s23, %s1308_s23 }
  0x50   :  { %419 = vmatprep.subr.bf16.mxu0 %v1200_v28  ;;  %377 = vmatpush1.bf16.msra.mxu1 %v1201_v30 }
  0x51   :  { %378 = vmatprep.subr.bf16.mxu1 %v1202_v31  ;;  %p1315_p9 = por %p1314_p8, %p1313_p7 }
  0x53   :  { %420 = vmatpush1.bf16.msra.mxu0 %v1198_v29  ;;  %p1316_p10 = pnand %p1315_p9, %p1309_p6 }
  0x54   :  { %421 = vmatprep.subr.bf16.mxu0 %v1206_v32  ;;  %379 = vmatpush1.bf16.msra.mxu1 %v1207_v34  ;;  %v199_v32 = vrot.slane %v182_v20, %v198_v24 }
  0x55   :  { %1004 = vmatprep.subr.mxu1 %v524_v46 }
  0x57   :  { %422 = vmatpush1.bf16.msra.mxu0 %v1204_v33 }
  0x58   :  { %1039 = vmatprep.subr.mxu0 %v505_v47 }
  0xfa   :  { %v140_v37 = vpop.f32.mrf.mxu0 }
  0xfb   :  { %v141_v39 = vadd.f32 %v888_v36, %v140_v37 }
  0xfc   :  { %v1002_v38 = vpop.f32.mrf.mxu0 }
  0xfd   :  { %v147_v43 = vmax.f32 %v141_v39, 0.0 }
  0xfe   :  { %v143_v40 = vpop.f32.mrf.mxu0 }
  0xff   :  { %v144_v41 = vadd.f32 %v888_v36, %v143_v40 }
 0x100   :  { %v1003_v42 = vpop.f32.mrf.mxu0 }
 0x101   :  { %v148_v44 = vmax.f32 %v144_v41, 0.0 }
 0x103   :  { %v149_v45 = vpack.c.bf16 %v148_v44, %v147_v43 }
 0x105   :  { %397 = vmatmul.mubr.bf16.vlgmr.msra.gmra.mxu1 %v149_v45  ;;  %440 = vmatmul.mubr.bf16.vlgmr.msra.gmra.mxu0 %v149_v45 }
 0x106   :  { %1005 = vmatpush3.msra.mxu1 %v524_v46  ;;  %1040 = vmatpush3.msra.mxu0 %v505_v47 }
 0x107   :  { %1006 = vmatprep.subr.mxu1 %v523_v48  ;;  %1041 = vmatprep.subr.mxu0 %v504_v49 }
 0x108   :  { %1007 = vmatpush3.msra.mxu1 %v523_v48  ;;  %1042 = vmatpush3.msra.mxu0 %v504_v49 }
 0x109   :  { %1008 = vmatprep.subr.mxu1 %v522_v50  ;;  %1043 = vmatprep.subr.mxu0 %v503_v51 }
 0x10a   :  { %1009 = vmatpush3.msra.mxu1 %v522_v50  ;;  %1044 = vmatpush3.msra.mxu0 %v503_v51 }
 0x10b   :  { %1010 = vmatprep.subr.mxu1 %v521_v52  ;;  %1045 = vmatprep.subr.mxu0 %v502_v53 }
 0x10c   :  { %1011 = vmatpush3.msra.mxu1 %v521_v52  ;;  %1046 = vmatpush3.msra.mxu0 %v502_v53 }
 0x10d   :  { %1012 = vmatprep.subr.mxu1 %v520_v54  ;;  %1047 = vmatprep.subr.mxu0 %v501_v55 }
 0x10e   :  { %1013 = vmatpush3.msra.mxu1 %v520_v54  ;;  %1048 = vmatpush3.msra.mxu0 %v501_v55 }
 0x10f   :  { %1014 = vmatprep.subr.mxu1 %v519_v56  ;;  %1049 = vmatprep.subr.mxu0 %v500_v57 }
 0x110   :  { %1015 = vmatpush3.msra.mxu1 %v519_v56  ;;  %1050 = vmatpush3.msra.mxu0 %v500_v57 }
 0x111   :  { %1016 = vmatprep.subr.mxu1 %v518_v58  ;;  %1051 = vmatprep.subr.mxu0 %v499_v59 }
 0x112   :  { %1017 = vmatpush3.msra.mxu1 %v518_v58  ;;  %1052 = vmatpush3.msra.mxu0 %v499_v59 }
 0x113   :  { %1018 = vmatprep.subr.mxu1 %v517_v60  ;;  %1053 = vmatprep.subr.mxu0 %v498_v61 }
 0x114   :  { %1019 = vmatpush3.msra.mxu1 %v517_v60  ;;  %1054 = vmatpush3.msra.mxu0 %v498_v61 }
 0x115   :  { %1020 = vmatprep.subr.mxu1 %v516_v62  ;;  %1055 = vmatprep.subr.mxu0 %v497_v63 }
 0x116   :  { %1021 = vmatpush3.msra.mxu1 %v516_v62  ;;  %1056 = vmatpush3.msra.mxu0 %v497_v63 }
 0x117   :  { %1022 = vmatprep.subr.mxu1 %v515_v0  ;;  %1057 = vmatprep.subr.mxu0 %v496_v1 }
 0x118   :  { %1023 = vmatpush3.msra.mxu1 %v515_v0  ;;  %1058 = vmatpush3.msra.mxu0 %v496_v1 }
 0x119   :  { %1024 = vmatprep.subr.mxu1 %v514_v2  ;;  %1059 = vmatprep.subr.mxu0 %v495_v3 }
 0x11a   :  { %1025 = vmatpush3.msra.mxu1 %v514_v2  ;;  %1060 = vmatpush3.msra.mxu0 %v495_v3 }
 0x11b   :  { %1026 = vmatprep.subr.mxu1 %v513_v4  ;;  %1061 = vmatprep.subr.mxu0 %v494_v5 }
 0x11c   :  { %1027 = vmatpush3.msra.mxu1 %v513_v4  ;;  %1062 = vmatpush3.msra.mxu0 %v494_v5 }
 0x11d   :  { %1028 = vmatprep.subr.mxu1 %v512_v6  ;;  %1063 = vmatprep.subr.mxu0 %v493_v7 }
 0x11e   :  { %1029 = vmatpush3.msra.mxu1 %v512_v6  ;;  %1064 = vmatpush3.msra.mxu0 %v493_v7 }
 0x11f   :  { %1030 = vmatprep.subr.mxu1 %v511_v8  ;;  %1065 = vmatprep.subr.mxu0 %v492_v9 }
 0x120   :  { %1031 = vmatpush3.msra.mxu1 %v511_v8  ;;  %1066 = vmatpush3.msra.mxu0 %v492_v9 }
 0x121   :  { %1032 = vmatprep.subr.mxu1 %v510_v10  ;;  %1067 = vmatprep.subr.mxu0 %v491_v11 }
 0x122   :  { %1033 = vmatpush3.msra.mxu1 %v510_v10  ;;  %1068 = vmatpush3.msra.mxu0 %v491_v11 }
 0x123   :  { %1034 = vmatprep.subr.mxu1 %v509_v12  ;;  %1069 = vmatprep.subr.mxu0 %v490_v13 }
 0x124   :  { %1035 = vmatpush3.msra.mxu1 %v509_v12  ;;  %1070 = vmatpush3.msra.mxu0 %v490_v13 }
 0x125   :  { %1074 = vmatprep.subr.mxu1 %v1403_v14  ;;  %1109 = vmatprep.subr.mxu0 %v1405_v15 }
 0x1c5   :  { %v398_v25 = vpop.f32.mrf.mxu1  ;;  %v441_v26 = vpop.f32.mrf.mxu0 }
 0x1c6   :  { %v399_v30 = vadd.f32 %v398_v25, %v187_v22  ;;  %v442_v34 = vadd.f32 %v441_v26, %v195_v27  ;;  %v788_v25 = vld [vmem:[#allocation8 + $0x1f0] sm:$0xff] }
 0x1c7   :  { %v400_v28 = vpop.f32.mrf.mxu1  ;;  %v443_v29 = vpop.f32.mrf.mxu0 }
 0x1c8   :  { %v401_v31 = vadd.f32 %v400_v28, %v191_v23  ;;  %v444_v38 = vadd.f32 %v443_v29, %v199_v32  ;;  %v787_v28 = vld [vmem:[#allocation8 + $0x1e8] sm:$0xff]  ;;  %v690_v29 = vld [vmem:[#allocation8 + $0x160] sm:$0xff] }
 0x1c9   :  { %v402_v33 = vpop.f32.mrf.mxu1  ;;  %v445_v36 = vpop.f32.mrf.mxu0 }
 0x1ca   :  { %v450_v35 = vmax.f32 %v399_v30, %v401_v31  ;;  %v403_v40 = vadd.f32 %v402_v33, %v187_v22  ;;  %v446_v45 = vadd.f32 %v445_v36, %v195_v27  ;;  %v691_v27 = vld [vmem:[#allocation8 + $0x168] sm:$0xff]  ;;  %v782_v36 = vld [vmem:[#allocation8 + $0x1c0] sm:$0xff] }
 0x1cb   :  { %v404_v37 = vpop.f32.mrf.mxu1  ;;  %v447_v44 = vpop.f32.mrf.mxu0  ;;  %v687_v33 = vld [vmem:[#allocation8 + $0x148] sm:$0xff] }
 0x1cc   :  { %v452_v39 = vmax.f32 %v450_v35, %v442_v34  ;;  %v405_v41 = vadd.f32 %v404_v37, %v191_v23  ;;  %v448_v50 = vadd.f32 %v447_v44, %v199_v32  ;;  %v692_v23 = vld [vmem:[#allocation8 + $0x170] sm:$0xff]  ;;  %v785_v32 = vld [vmem:[#allocation8 + $0x1d8] sm:$0xff]  ;;  %v686_v35 = vld [vmem:[#allocation8 + $0x140] sm:$0xff] }
 0x1cd   :  { %v685_v37 = vld [vmem:[#allocation8 + $0x138] sm:$0xff]  ;;  %v778_v44 = vld [vmem:[#allocation8 + $0x1a0] sm:$0xff] }
 0x1ce   :  { %v454_v42 = vmax.f32 %v452_v39, %v444_v38  ;;  %v451_v43 = vmax.f32 %v403_v40, %v405_v41  ;;  %v684_v39 = vld [vmem:[#allocation8 + $0x130] sm:$0xff] }
 0x1d0   :  { %v456_v46 = vsub.f32 %v399_v30, %v454_v42  ;;  %v462_v47 = vsub.f32 %v401_v31, %v454_v42  ;;  %v468_v48 = vsub.f32 %v442_v34, %v454_v42  ;;  %v474_v49 = vsub.f32 %v444_v38, %v454_v42  ;;  %v786_v30 = vld [vmem:[#allocation8 + $0x1e0] sm:$0xff]  ;;  %v689_v31 = vld [vmem:[#allocation8 + $0x158] sm:$0xff]  ;;  %v783_v34 = vld [vmem:[#allocation8 + $0x1c8] sm:$0xff] }
 0x1d1   :  { %v453_v51 = vmax.f32 %v451_v43, %v446_v45  ;;  %v781_v38 = vld [vmem:[#allocation8 + $0x1b8] sm:$0xff]  ;;  %v779_v42 = vld [vmem:[#allocation8 + $0x1a8] sm:$0xff]  ;;  %v682_v43 = vld [vmem:[#allocation8 + $0x120] sm:$0xff] }
 0x1d2   :  { %v458_v52 = vmul.f32 1.442695, %v456_v46  ;;  %v464_v53 = vmul.f32 1.442695, %v462_v47  ;;  %v470_v54 = vmul.f32 1.442695, %v468_v48 }
 0x1d3   :  { %v455_v55 = vmax.f32 %v453_v51, %v448_v50  ;;  %v476_v56 = vmul.f32 1.442695, %v474_v49  ;;  %v777_v46 = vld [vmem:[#allocation8 + $0x198] sm:$0xff]  ;;  %v680_v47 = vld [vmem:[#allocation8 + $0x110] sm:$0xff]  ;;  %v679_v49 = vld [vmem:[#allocation8 + $0x108] sm:$0xff] }
 0x1d4   :  { %1208 = vpow2.f32 %v458_v52  ;;  %v776_v48 = vld [vmem:[#allocation8 + $0x190] sm:$0xff]  ;;  %v678_v51 = vld [vmem:[#allocation8 + $0x100] sm:$0xff] }
 0x1d5   :  { %1210 = vpow2.f32 %v464_v53  ;;  %v457_v57 = vsub.f32 %v403_v40, %v455_v55  ;;  %v463_v58 = vsub.f32 %v405_v41, %v455_v55  ;;  %v469_v59 = vsub.f32 %v446_v45, %v455_v55  ;;  %v780_v40 = vld [vmem:[#allocation8 + $0x1b0] sm:$0xff]  ;;  %v683_v41 = vld [vmem:[#allocation8 + $0x128] sm:$0xff]  ;;  %v681_v45 = vld [vmem:[#allocation8 + $0x118] sm:$0xff] }
 0x1d6   :  { %v475_v60 = vsub.f32 %v448_v50, %v455_v55  ;;  %1212 = vpow2.f32 %v470_v54  ;;  %v775_v50 = vld [vmem:[#allocation8 + $0x188] sm:$0xff]  ;;  %v774_v52 = vld [vmem:[#allocation8 + $0x180] sm:$0xff] }
 0x1d7   :  { %v460_v61 = vmul.f32 1.442695, %v457_v57  ;;  %v466_v62 = vmul.f32 1.442695, %v463_v58  ;;  %1214 = vpow2.f32 %v476_v56  ;;  %v472_v63 = vmul.f32 1.442695, %v469_v59 }
 0x1d8   :  { %v478_v0 = vmul.f32 1.442695, %v475_v60 }
 0x1d9   :  { %1216 = vpow2.f32 %v460_v61 }
 0x1da   :  { %1218 = vpow2.f32 %v466_v62 }
 0x1db   :  { %1220 = vpow2.f32 %v472_v63 }
 0x1dc   :  { %1222 = vpow2.f32 %v478_v0 }
 0x1e1   :  { %v1209_v1 = vpop.eup %1208 }
 0x1e2   :  { %v1211_v2 = vpop.eup %1210 }
 0x1e3   :  { %v480_v3 = vadd.f32 %v1211_v2, %v1209_v1  ;;  %v1213_v4 = vpop.eup %1212 }
 0x1e4   :  { %v1215_v5 = vpop.eup %1214 }
 0x1e5   :  { %v482_v6 = vadd.f32 %v1213_v4, %v480_v3 }
 0x1e6   :  { %v1217_v7 = vpop.eup %1216 }
 0x1e7   :  { %v1219_v8 = vpop.eup %1218  ;;  %v484_v9 = vadd.f32 %v1215_v5, %v482_v6 }
 0x1e8   :  { %v481_v10 = vadd.f32 %v1219_v8, %v1217_v7  ;;  %v1412_v11 = vpop.eup %1220 }
 0x1e9   :  { %1224 = vrcp.f32 %v484_v9  ;;  %v1415_v13 = vpop.eup %1222 }
 0x1ea   :  { %v483_v12 = vadd.f32 %v1412_v11, %v481_v10 }
 0x1ec   :  { %v485_v16 = vadd.f32 %v1415_v13, %v483_v12 }
 0x1ee   :  { %1226 = vrcp.f32 %v485_v16 }
 0x1f6   :  { %v1225_v17 = vpop.eup %1224 }
 0x1f7   :  { %v506_v18 = vmul.f32 %v1225_v17, %v1211_v2  ;;  %v488_v19 = vmul.f32 %v1225_v17, %v1209_v1  ;;  %v675_v24 = vmul.f32 %v1225_v17, %v1213_v4  ;;  %v771_v26 = vmul.f32 %v1225_v17, %v1215_v5 }
 0x1f9   :  { %1036 = vmatprep.mubr.f32.mxu1 %v506_v18  ;;  %1071 = vmatprep.mubr.f32.mxu0 %v488_v19 }
 0x1fb   :  { %v1418_v20 = vpop.eup %1226 }
 0x1fc   :  { %v507_v21 = vmul.f32 %v1418_v20, %v1219_v8  ;;  %v489_v22 = vmul.f32 %v1418_v20, %v1217_v7  ;;  %v676_v53 = vmul.f32 %v1418_v20, %v1412_v11  ;;  %v772_v54 = vmul.f32 %v1418_v20, %v1415_v13 }
 0x1fe   :  { %1037 = vmatmul.mubr.f32.vlgmr.msra.gmra.mxu1 %v507_v21  ;;  %1072 = vmatmul.mubr.f32.vlgmr.msra.gmra.mxu0 %v489_v22 }
 0x1ff   :  { %1075 = vmatpush3.msra.mxu1 %v1403_v14  ;;  %1110 = vmatpush3.msra.mxu0 %v1405_v15  ;;  %v688_v14 = vld [vmem:[#allocation8 + $0x150] sm:$0xff] }
 0x200   :  { %1076 = vmatprep.subr.mxu1 %v692_v23  ;;  %1106 = vmatprep.mubr.f32.mxu1 %v675_v24  ;;  %v784_v15 = vld [vmem:[#allocation8 + $0x1d0] sm:$0xff] }
 0x201   :  { %1111 = vmatprep.subr.mxu0 %v788_v25  ;;  %1141 = vmatprep.mubr.f32.mxu0 %v771_v26 }
 0x202   :  { %1077 = vmatpush3.msra.mxu1 %v692_v23  ;;  %1112 = vmatpush3.msra.mxu0 %v788_v25 }
 0x203   :  { %1078 = vmatprep.subr.mxu1 %v691_v27  ;;  %1113 = vmatprep.subr.mxu0 %v787_v28 }
 0x204   :  { %1079 = vmatpush3.msra.mxu1 %v691_v27  ;;  %1114 = vmatpush3.msra.mxu0 %v787_v28 }
 0x205   :  { %1080 = vmatprep.subr.mxu1 %v690_v29  ;;  %1115 = vmatprep.subr.mxu0 %v786_v30 }
 0x206   :  { %1081 = vmatpush3.msra.mxu1 %v690_v29  ;;  %1116 = vmatpush3.msra.mxu0 %v786_v30 }
 0x207   :  { %1082 = vmatprep.subr.mxu1 %v689_v31  ;;  %1117 = vmatprep.subr.mxu0 %v785_v32 }
 0x208   :  { %1083 = vmatpush3.msra.mxu1 %v689_v31  ;;  %1118 = vmatpush3.msra.mxu0 %v785_v32 }
 0x209   :  { %1084 = vmatprep.subr.mxu1 %v688_v14  ;;  %1119 = vmatprep.subr.mxu0 %v784_v15 }
 0x20a   :  { %1085 = vmatpush3.msra.mxu1 %v688_v14  ;;  %1120 = vmatpush3.msra.mxu0 %v784_v15 }
 0x20b   :  { %1086 = vmatprep.subr.mxu1 %v687_v33  ;;  %1121 = vmatprep.subr.mxu0 %v783_v34 }
 0x20c   :  { %1087 = vmatpush3.msra.mxu1 %v687_v33  ;;  %1122 = vmatpush3.msra.mxu0 %v783_v34 }
 0x20d   :  { %1088 = vmatprep.subr.mxu1 %v686_v35  ;;  %1123 = vmatprep.subr.mxu0 %v782_v36 }
 0x20e   :  { %1089 = vmatpush3.msra.mxu1 %v686_v35  ;;  %1124 = vmatpush3.msra.mxu0 %v782_v36 }
 0x20f   :  { %1090 = vmatprep.subr.mxu1 %v685_v37  ;;  %1125 = vmatprep.subr.mxu0 %v781_v38 }
 0x210   :  { %1091 = vmatpush3.msra.mxu1 %v685_v37  ;;  %1126 = vmatpush3.msra.mxu0 %v781_v38 }
 0x211   :  { %1092 = vmatprep.subr.mxu1 %v684_v39  ;;  %1127 = vmatprep.subr.mxu0 %v780_v40 }
 0x212   :  { %1093 = vmatpush3.msra.mxu1 %v684_v39  ;;  %1128 = vmatpush3.msra.mxu0 %v780_v40 }
 0x213   :  { %1094 = vmatprep.subr.mxu1 %v683_v41  ;;  %1129 = vmatprep.subr.mxu0 %v779_v42 }
 0x214   :  { %1095 = vmatpush3.msra.mxu1 %v683_v41  ;;  %1130 = vmatpush3.msra.mxu0 %v779_v42 }
 0x215   :  { %1096 = vmatprep.subr.mxu1 %v682_v43  ;;  %1131 = vmatprep.subr.mxu0 %v778_v44 }
 0x216   :  { %1097 = vmatpush3.msra.mxu1 %v682_v43  ;;  %1132 = vmatpush3.msra.mxu0 %v778_v44 }
 0x217   :  { %1098 = vmatprep.subr.mxu1 %v681_v45  ;;  %1133 = vmatprep.subr.mxu0 %v777_v46 }
 0x218   :  { %1099 = vmatpush3.msra.mxu1 %v681_v45  ;;  %1134 = vmatpush3.msra.mxu0 %v777_v46 }
 0x219   :  { %1100 = vmatprep.subr.mxu1 %v680_v47  ;;  %1135 = vmatprep.subr.mxu0 %v776_v48 }
 0x21a   :  { %1101 = vmatpush3.msra.mxu1 %v680_v47  ;;  %1136 = vmatpush3.msra.mxu0 %v776_v48 }
 0x21b   :  { %1102 = vmatprep.subr.mxu1 %v679_v49  ;;  %1137 = vmatprep.subr.mxu0 %v775_v50 }
 0x21c   :  { %1103 = vmatpush3.msra.mxu1 %v679_v49  ;;  %1138 = vmatpush3.msra.mxu0 %v775_v50 }
 0x21d   :  { %1104 = vmatprep.subr.mxu1 %v678_v51  ;;  %1139 = vmatprep.subr.mxu0 %v774_v52 }
 0x21e   :  { %1105 = vmatpush3.msra.mxu1 %v678_v51  ;;  %1140 = vmatpush3.msra.mxu0 %v774_v52 }
 0x21f   :  { %1107 = vmatmul.mubr.f32.vlgmr.msra.gmra.mxu1 %v676_v53  ;;  %1142 = vmatmul.mubr.f32.vlgmr.msra.gmra.mxu0 %v772_v54 }
 0x2be   :  { %v1038_v55 = vpop.f32.mrf.mxu1  ;;  %v1073_v56 = vpop.f32.mrf.mxu0 }
 0x2bf   :  { %v672_v59 = vadd.f32 %v1073_v56, %v1038_v55 }
 0x2c0   :  { %v591_v57 = vpop.f32.mrf.mxu1  ;;  %v666_v58 = vpop.f32.mrf.mxu0 }
 0x2c1   :  { %v667_v62 = vadd.f32 %v666_v58, %v591_v57 }
 0x2df   :  { %v1108_v60 = vpop.f32.mrf.mxu1  ;;  %v1143_v61 = vpop.f32.mrf.mxu0 }
 0x2e0   :  { %v770_v63 = vadd.f32 %v1108_v60, %v672_v59 }
 0x2e1   :  { %v760_v0 = vpop.f32.mrf.mxu1  ;;  %v856_v3 = vpop.f32.mrf.mxu0 }
 0x2e2   :  { %v866_v1 = vadd.f32 %v1143_v61, %v770_v63  ;;  %v769_v2 = vadd.f32 %v760_v0, %v667_v62 }
 0x2e4   :  { %868 = vst [vmem:[#allocation10 + $0x8] sm:$0xff] %v866_v1  ;;  %v865_v4 = vadd.f32 %v856_v3, %v769_v2 }
 0x2e6   :  { %867 = vst [vmem:[#allocation10] sm:$0xff] %v865_v4 }
 0x2e7   :  { %1319 = shalt.err (!%p1316_p10)
}
 0x2e8   :  { %880 = dma.vmem_to_hbm [thread:$0]  %s875_s22, 256, %s1440_s6, [#allocation4], %s1344_s17, %s1344_s17, %s1345_s18  }
 0x2e9   :  { %1334 = dma.done.wait [#allocation4], 256  }
 0x2ea   :  { %1335 = vsyncadd [#allocation4], 4294967040 }
 0x2eb   :  { %884 = vsyncpa [#allocation3], 1 }
 0x2ec   :  { %885 = vsyncpa [#allocation6], 1 }
 0x2ed   :  { %886 = vsyncpa [#allocation9], 1 }
 0x2ee   :  { %887 = vsyncpa [#allocation4], 1 }

</bundles_post_ra>
